<compile_context>
chip_gen: v7x
topology: tpu7x:2x2x1
jax: 0.10.0
libtpu: 0.0.40
codegen_flags: <defaults>
</compile_context>

<pallas_src>
import jax
import jax.numpy as jnp
from jax import lax
from jax.experimental import pallas as pl
from jax.experimental.pallas import tpu as pltpu


def _round_up(n, m):
    return ((n + m - 1) // m) * m


def dqn_kernel(x_ref, w1t_ref, b1t_ref, w2t_ref, b2t_ref, w3_ref, b3_ref, o_ref):
    # x tile: (tb, F) f32 -> bf16 on the VPU (cast is free in this regime).
    x_bf = x_ref[...].astype(jnp.bfloat16)

    # fc1, transposed: h1T[o, b] = sum_f w1t[o, f] * x[b, f]  (A @ B^T on MXU).
    # Batch sits on the lane (N) dimension -> full-width vregs downstream.
    h1t = lax.dot_general(
        w1t_ref[...], x_bf,
        dimension_numbers=(((1,), (1,)), ((), ())),
        preferred_element_type=jnp.float32)                    # (100, tb) f32
    h1t = jnp.maximum(h1t + b1t_ref[...], 0.0)                 # bias/ReLU in f32

    # fc2, transposed: standard matmul, batch stays on lanes.
    h2t = jnp.dot(w2t_ref[...], h1t.astype(jnp.bfloat16),
                  preferred_element_type=jnp.float32)          # (20, tb) f32
    h2t = jnp.maximum(h2t + b2t_ref[...], 0.0)

    # fc3 (output width 1): f32 multiply + sublane reduction (VPU/XLU) gives the
    # result directly as one lane-dense row (1, tb) — no padded columns, no
    # masked 1-lane stores.
    out_row = jnp.sum(h2t * w3_ref[...], axis=0, keepdims=True) + b3_ref[...]
    o_ref[...] = out_row.astype(o_ref.dtype)


def prepare_params(w1, b1, w2, b2, w3, b3):
    """One-time, off the inference hot path: transpose to the batch-on-lanes
    layout and pre-cast the MXU operands to bf16."""
    return (
        jnp.asarray(w1.T, jnp.bfloat16),            # (100, F)
        jnp.asarray(b1.reshape(-1, 1), jnp.float32),  # (100, 1)
        jnp.asarray(w2.T, jnp.bfloat16),            # (20, 100)
        jnp.asarray(b2.reshape(-1, 1), jnp.float32),  # (20, 1)
        jnp.asarray(w3, jnp.float32),               # (20, 1)
        jnp.asarray(b3.reshape(1, 1), jnp.float32),   # (1, 1)
    )


def dqn_forward(x, params, *, tb=2048):
    """x: (batch, in_features) f32; params from prepare_params. -> (batch, 1) f32."""
    w1t, b1t, w2t, b2t, w3, b3 = params
    batch, in_features = x.shape

    # Batch tile = lane dim of the output block, so it must be a multiple of 128
    # unless the block covers the whole array (small-batch case). For large
    # batches aim for >= 2 grid steps so the 'parallel' axis can shard across
    # v7x's two TensorCores. No wrapper-side padding of x: Pallas masks the
    # ragged last block on both the x read and the output writeback.
    if batch <= 128:
        tb_eff = batch
    else:
        tb = max(128, (int(tb) // 128) * 128)
        tb_eff = min(tb, _round_up(pl.cdiv(batch, 2), 128))
    grid = (pl.cdiv(batch, tb_eff),)

    # Weights/biases: full-array blocks with constant index_maps -> VMEM-resident.
    def const(a):
        return pl.BlockSpec(a.shape, lambda i: (0,) * a.ndim)

    out = pl.pallas_call(
        dqn_kernel,
        out_shape=jax.ShapeDtypeStruct((1, batch), jnp.float32),
        grid=grid,
        in_specs=[
            pl.BlockSpec((tb_eff, in_features), lambda i: (i, 0)),  # x tile (f32)
            const(w1t), const(b1t),
            const(w2t), const(b2t),
            const(w3), const(b3),
        ],
        out_specs=pl.BlockSpec((1, tb_eff), lambda i: (0, i)),
        compiler_params=pltpu.CompilerParams(
            dimension_semantics=("parallel",)),
    )(x, w1t, b1t, w2t, b2t, w3, b3)

    # (1, batch) row -> (batch, 1) column: pure metadata reshape, no HBM pass.
    return out.reshape(batch, 1)


def init_params(key, input_size):
    # Deterministic synthetic init (PyTorch-like uniform fan-in scaling).
    # Weights stored as (in_features, out_features) == PyTorch W.T.
    ks = jax.random.split(key, 6)

    def lin(kw, kb, fan_in, fan_out):
        bound = 1.0 / jnp.sqrt(fan_in)
        w = jax.random.uniform(kw, (fan_in, fan_out), jnp.float32, -bound, bound)
        b = jax.random.uniform(kb, (1, fan_out), jnp.float32, -bound, bound)
        return w, b

    w1, b1 = lin(ks[0], ks[1], input_size, 100)
    w2, b2 = lin(ks[2], ks[3], 100, 20)
    w3, b3 = lin(ks[4], ks[5], 20, 1)
    return w1, b1, w2, b2, w3, b3


def ref_forward(x, w1, b1, w2, b2, w3, b3):
    # Pure-JAX reference mirroring the kernel's bf16-matmul / f32-accumulate math
    # for fc1/fc2 and plain f32 math for fc3.
    bf = jnp.bfloat16
    h = jnp.dot(x.astype(bf), w1.astype(bf), preferred_element_type=jnp.float32) + b1
    h = jnp.maximum(h, 0.0)
    h = jnp.dot(h.astype(bf), w2.astype(bf), preferred_element_type=jnp.float32) + b2
    h = jnp.maximum(h, 0.0)
    return jnp.dot(h, w3) + b3


if __name__ == "__main__":
    key = jax.random.PRNGKey(0)
    k1, k2, k3, kp = jax.random.split(key, 4)

    input_size = 32
    raw = init_params(kp, input_size)
    params = prepare_params(*raw)

    fwd = jax.jit(dqn_forward)

    # Small shape consistent with the module (batch=2, input_size=32): one block.
    x_small = jax.random.normal(k1, (2, input_size), jnp.float32)
    out_small = jax.block_until_ready(fwd(x_small, params))
    ref_small = ref_forward(x_small, *raw)
    assert out_small.shape == (2, 1)
    assert jnp.allclose(out_small, ref_small, atol=5e-4, rtol=5e-4)

    # Batch not a tile multiple: 2-step grid with a ragged last block
    # (exercises edge-block masking on both the x read and the output write).
    x_mid = jax.random.normal(k2, (300, input_size), jnp.float32)
    out_mid = jax.block_until_ready(fwd(x_mid, params))
    ref_mid = ref_forward(x_mid, *raw)
    assert out_mid.shape == (300, 1)
    assert jnp.allclose(out_mid, ref_mid, atol=5e-4, rtol=5e-4)

    # Larger, exact-multiple batch: multi-step parallel grid, no edge block.
    x_big = jax.random.normal(k3, (1024, input_size), jnp.float32)
    out_big = jax.block_until_ready(fwd(x_big, params))
    ref_big = ref_forward(x_big, *raw)
    assert out_big.shape == (1024, 1)
    assert jnp.allclose(out_big, ref_big, atol=5e-4, rtol=5e-4)

    print("KERNEL_OK")
</pallas_src>

<mosaic_0001>
module attributes {stable_mosaic.version = 11 : i64} {
  func.func @dqn_kernel(%arg0: i32, %arg1: memref<2x32xf32, #tpu.memory_space<vmem>>, %arg2: memref<100x32xbf16, #tpu.memory_space<vmem>>, %arg3: memref<100x1xf32, #tpu.memory_space<vmem>>, %arg4: memref<20x100xbf16, #tpu.memory_space<vmem>>, %arg5: memref<20x1xf32, #tpu.memory_space<vmem>>, %arg6: memref<20x1xf32, #tpu.memory_space<vmem>>, %arg7: memref<1x1xf32, #tpu.memory_space<vmem>>, %arg8: memref<1x2xf32, #tpu.memory_space<vmem>>) attributes {dimension_semantics = [#tpu.dimension_semantics<parallel>], iteration_bounds = array<i64: 1>, scalar_prefetch = 0 : i64, scratch_operands = 0 : i64, tpu.core_type = #tpu.core_type<tc>, window_params = [{transform_indices = @transform_0, window_bounds = array<i64: 2, 32>}, {pipeline_mode = #tpu.pipeline_mode<synchronous>, transform_indices = @transform_1, window_bounds = array<i64: 100, 32>}, {pipeline_mode = #tpu.pipeline_mode<synchronous>, transform_indices = @transform_2, window_bounds = array<i64: 100, 1>}, {pipeline_mode = #tpu.pipeline_mode<synchronous>, transform_indices = @transform_3, window_bounds = array<i64: 20, 100>}, {pipeline_mode = #tpu.pipeline_mode<synchronous>, transform_indices = @transform_4, window_bounds = array<i64: 20, 1>}, {pipeline_mode = #tpu.pipeline_mode<synchronous>, transform_indices = @transform_5, window_bounds = array<i64: 20, 1>}, {pipeline_mode = #tpu.pipeline_mode<synchronous>, transform_indices = @transform_6, window_bounds = array<i64: 1, 1>}, {transform_indices = @transform_7, window_bounds = array<i64: 1, 2>}]} {
    %c0 = arith.constant 0 : index
    %c0_0 = arith.constant 0 : index
    %0 = vector.load %arg1[%c0, %c0_0] : memref<2x32xf32, #tpu.memory_space<vmem>>, vector<2x32xf32>
    %1 = arith.truncf %0 : vector<2x32xf32> to vector<2x32xbf16>
    %c0_1 = arith.constant 0 : index
    %c0_2 = arith.constant 0 : index
    %2 = vector.load %arg2[%c0_1, %c0_2] : memref<100x32xbf16, #tpu.memory_space<vmem>>, vector<100x32xbf16>
    %cst = arith.constant dense<0.000000e+00> : vector<100x2xf32>
    %3 = tpu.matmul %2, %1, %cst {dimension_numbers = #tpu.dot_dimension_numbers<[1], [1], [0], [0], [0, 0, 1, 0], [], []>} : vector<100x32xbf16>, vector<2x32xbf16>, vector<100x2xf32> -> vector<100x2xf32>
    %c0_3 = arith.constant 0 : index
    %c0_4 = arith.constant 0 : index
    %4 = vector.load %arg3[%c0_3, %c0_4] : memref<100x1xf32, #tpu.memory_space<vmem>>, vector<100x1xf32>
    %5 = vector.broadcast %4 : vector<100x1xf32> to vector<100x2xf32>
    %6 = arith.addf %3, %5 : vector<100x2xf32>
    %cst_5 = arith.constant 0.000000e+00 : f32
    %7 = vector.broadcast %cst_5 : f32 to vector<100x2xf32>
    %8 = arith.maximumf %6, %7 : vector<100x2xf32>
    %c0_6 = arith.constant 0 : index
    %c0_7 = arith.constant 0 : index
    %9 = vector.load %arg4[%c0_6, %c0_7] : memref<20x100xbf16, #tpu.memory_space<vmem>>, vector<20x100xbf16>
    %10 = arith.truncf %8 : vector<100x2xf32> to vector<100x2xbf16>
    %cst_8 = arith.constant dense<0.000000e+00> : vector<20x2xf32>
    %11 = tpu.matmul %9, %10, %cst_8 {dimension_numbers = #tpu.dot_dimension_numbers<[1], [0], [0], [1], [0, 0, 1, 1], [], []>} : vector<20x100xbf16>, vector<100x2xbf16>, vector<20x2xf32> -> vector<20x2xf32>
    %c0_9 = arith.constant 0 : index
    %c0_10 = arith.constant 0 : index
    %12 = vector.load %arg5[%c0_9, %c0_10] : memref<20x1xf32, #tpu.memory_space<vmem>>, vector<20x1xf32>
    %13 = vector.broadcast %12 : vector<20x1xf32> to vector<20x2xf32>
    %14 = arith.addf %11, %13 : vector<20x2xf32>
    %cst_11 = arith.constant 0.000000e+00 : f32
    %15 = vector.broadcast %cst_11 : f32 to vector<20x2xf32>
    %16 = arith.maximumf %14, %15 : vector<20x2xf32>
    %c0_12 = arith.constant 0 : index
    %c0_13 = arith.constant 0 : index
    %17 = vector.load %arg6[%c0_12, %c0_13] : memref<20x1xf32, #tpu.memory_space<vmem>>, vector<20x1xf32>
    %18 = vector.broadcast %17 : vector<20x1xf32> to vector<20x2xf32>
    %19 = arith.mulf %16, %18 : vector<20x2xf32>
    %cst_14 = arith.constant dense<0.000000e+00> : vector<2xf32>
    %20 = vector.multi_reduction <add>, %19, %cst_14 [0] : vector<20x2xf32> to vector<2xf32>
    %21 = vector.shape_cast %20 : vector<2xf32> to vector<1x2xf32>
    %c0_15 = arith.constant 0 : index
    %c0_16 = arith.constant 0 : index
    %22 = vector.load %arg7[%c0_15, %c0_16] : memref<1x1xf32, #tpu.memory_space<vmem>>, vector<1x1xf32>
    %23 = vector.broadcast %22 : vector<1x1xf32> to vector<1x2xf32>
    %24 = arith.addf %21, %23 : vector<1x2xf32>
    %c0_17 = arith.constant 0 : index
    %c0_18 = arith.constant 0 : index
    %25 = vector.load %arg8[%c0_17, %c0_18] : memref<1x2xf32, #tpu.memory_space<vmem>>, vector<1x2xf32>
    tpu.vector_store %arg8[%c0_17, %c0_18], %24 {strides = array<i32>} : memref<1x2xf32, #tpu.memory_space<vmem>>, vector<1x2xf32>,
    return
  }
  func.func @transform_0(%arg0: i32) -> (i32, i32) {
    %c0_i32 = arith.constant 0 : i32
    %c0_i32_0 = arith.constant 0 : i32
    return %arg0, %c0_i32 : i32, i32
  }
  func.func @transform_1(%arg0: i32) -> (i32, i32) {
    %c0_i32 = arith.constant 0 : i32
    %c0_i32_0 = arith.constant 0 : i32
    %c0_i32_1 = arith.constant 0 : i32
    return %c0_i32, %c0_i32_0 : i32, i32
  }
  func.func @transform_2(%arg0: i32) -> (i32, i32) {
    %c0_i32 = arith.constant 0 : i32
    %c0_i32_0 = arith.constant 0 : i32
    %c0_i32_1 = arith.constant 0 : i32
    return %c0_i32, %c0_i32_0 : i32, i32
  }
  func.func @transform_3(%arg0: i32) -> (i32, i32) {
    %c0_i32 = arith.constant 0 : i32
    %c0_i32_0 = arith.constant 0 : i32
    %c0_i32_1 = arith.constant 0 : i32
    return %c0_i32, %c0_i32_0 : i32, i32
  }
  func.func @transform_4(%arg0: i32) -> (i32, i32) {
    %c0_i32 = arith.constant 0 : i32
    %c0_i32_0 = arith.constant 0 : i32
    %c0_i32_1 = arith.constant 0 : i32
    return %c0_i32, %c0_i32_0 : i32, i32
  }
  func.func @transform_5(%arg0: i32) -> (i32, i32) {
    %c0_i32 = arith.constant 0 : i32
    %c0_i32_0 = arith.constant 0 : i32
    %c0_i32_1 = arith.constant 0 : i32
    return %c0_i32, %c0_i32_0 : i32, i32
  }
  func.func @transform_6(%arg0: i32) -> (i32, i32) {
    %c0_i32 = arith.constant 0 : i32
    %c0_i32_0 = arith.constant 0 : i32
    %c0_i32_1 = arith.constant 0 : i32
    return %c0_i32, %c0_i32_0 : i32, i32
  }
  func.func @transform_7(%arg0: i32) -> (i32, i32) {
    %c0_i32 = arith.constant 0 : i32
    %c0_i32_0 = arith.constant 0 : i32
    return %c0_i32, %arg0 : i32, i32
  }
}

</mosaic_0001>

<bundles_post_ra>
// kernel: dqn_forward.1
= control target key start
LH: loop header
LB: loop body
LE: loop exit
PB: predicated region body
PF: predicated region fallthrough
CT: control target
= control target key end

     0   :  { %s735_s0 = inlined_call_operand.vmem [shape: f32[2,32], index: 0, kind: input, shape index: {}]   ;;  %s736_s1 = inlined_call_operand.vmem [shape: bf16[100,32], index: 1, kind: input, shape index: {}]   ;;  %s737_s2 = inlined_call_operand.vmem [shape: f32[100,1], index: 2, kind: input, shape index: {}]   ;;  %s738_s3 = inlined_call_operand.vmem [shape: bf16[20,100], index: 3, kind: input, shape index: {}]   ;;  %s739_s4 = inlined_call_operand.vmem [shape: f32[20,1], index: 4, kind: input, shape index: {}]   ;;  %s740_s5 = inlined_call_operand.vmem [shape: f32[20,1], index: 5, kind: input, shape index: {}]   ;;  %s741_s6 = inlined_call_operand.<no memory space> [shape: f32[1,1], index: 6, kind: input, shape index: {}]   ;;  %s742_s7 = inlined_call_operand.hbm [shape: f32[1,2], index: 7, kind: output, shape index: {}]  }
   0x1   :  { %v12_v0 = vstv %s741_s6 }
   0x2   :  { %13 = vst [vmem:[#allocation2] sm:$0x1] %v12_v0 }
   0x3   :  { %v30_v1 = vld [vmem:[%s735_s0] sm:$0x3]  ;;  %vm156_vm0 = vcmask 261120   ;;  %v564_v2 = vmov 0.0   ;;  %vm565_vm1 = vmmov 0   ;;  %v566_v5 = vmov 0  }
   0x4   :  { %476 = vmatprep.subr.bf16.mxu0 %v564_v2  ;;  %v31_v3 = vpack.c.bf16 %v30_v1, %v30_v1  ;;  %478 = vmatprep.mubr.msk.bf16.mxu0 %vm565_vm1, %v564_v2  ;;  %v531_v6 = vld [vmem:[%s736_s1] sm:$0xff]   ;;  %v47_v8 = vld [vmem:[%s737_s2 + $0x10] sm:$0xff]  ;;  %v46_v9 = vld [vmem:[%s737_s2 + $0x8] sm:$0xff] }
   0x5   :  { %529 = vset.pattern.permute.xlu0 %v566_v5  ;;  %530 = vset.pattern.permute.xlu1 %v566_v5  ;;  %v45_v7 = vld [vmem:[%s737_s2] sm:$0xff]  ;;  %v48_v10 = vld [vmem:[%s737_s2 + $0x18] sm:$0xff]  ;;  %v50_v12 = vld [vmem:[%s737_s2 + $0x28] sm:$0xff] }
   0x6   :  { %v179_v4 = vsel %vm156_vm0, %v31_v3, 0  ;;  %60 = vperm.xlu0 %529, %v45_v7   ;;  %70 = vperm.xlu1 %530, %v47_v8   ;;  %v49_v11 = vld [vmem:[%s737_s2 + $0x20] sm:$0xff]  ;;  %v532_v13 = vld [vmem:[%s736_s1 + $0x8] sm:$0xff]  }
   0x7   :  { %477 = vmatpush3.bf16.xpose.msra.mxu0 %v179_v4 }
   0xa   :  { %65 = vperm.xlu0 %529, %v46_v9   ;;  %75 = vperm.xlu1 %530, %v48_v10  }
   0xe   :  { %479 = vmatmul.mubr.msk.bf16.vlgmr.msra.gmra.mrb[0].mxu0 %vm156_vm0, %v531_v6 }
   0xf   :  { %482 = vmatprep.mubr.msk.bf16.mxu0 %vm565_vm1, %v564_v2 }
  0x10   :  { %14 = vsyncpa [#allocation4], 0  ;;  %80 = vperm.xlu0 %529, %v49_v11   ;;  %85 = vperm.xlu1 %530, %v50_v12   ;;  %v51_v14 = vld [vmem:[%s737_s2 + $0x30] sm:$0xff]  ;;  %v52_v15 = vld [vmem:[%s737_s2 + $0x38] sm:$0xff]  ;;  %vm318_vm2 = vcmask 818176   ;;  %vm325_vm3 = vcmask 1041408  }
  0x11   :  { %v53_v16 = vld [vmem:[%s737_s2 + $0x40] sm:$0xff]  ;;  %v54_v17 = vld [vmem:[%s737_s2 + $0x48] sm:$0xff]  ;;  %v533_v18 = vld [vmem:[%s736_s1 + $0x10] sm:$0xff]   ;;  %vm401_vm4 = vcmask 15360   ;;  %vm405_vm5 = vcmask 11264   ;;  %vm425_vm6 = vcmask 8192  }
  0x12   :  { %v55_v19 = vld [vmem:[%s737_s2 + $0x50] sm:$0xff]  ;;  %v56_v20 = vld [vmem:[%s737_s2 + $0x58] sm:$0xff]  ;;  %v57_v21 = vld [vmem:[%s737_s2 + $0x60] sm:$0xf] }
  0x13   :  { %v292_v22 = vld [vmem:[%s739_s4] sm:$0xff]  ;;  %v534_v23 = vld [vmem:[%s736_s1 + $0x18] sm:$0xff]   ;;  %v293_v24 = vld [vmem:[%s739_s4 + $0x8] sm:$0xff] }
  0x14   :  { %90 = vperm.xlu0 %529, %v51_v14   ;;  %95 = vperm.xlu1 %530, %v52_v15   ;;  %v294_v25 = vld [vmem:[%s739_s4 + $0x10] sm:$0xf]  ;;  %v380_v26 = vld [vmem:[%s740_s5] sm:$0xff]  ;;  %v381_v27 = vld [vmem:[%s740_s5 + $0x8] sm:$0xff] }
  0x15   :  { %v535_v28 = vld [vmem:[%s736_s1 + $0x20] sm:$0xff]   ;;  %v382_v29 = vld [vmem:[%s740_s5 + $0x10] sm:$0xf]  ;;  %v536_v31 = vld [vmem:[%s736_s1 + $0x28] sm:$0xff]  }
  0x16   :  { %483 = vmatmul.mubr.msk.bf16.gmra.mrb[4].mxu0 %vm156_vm0, %v532_v13  ;;  %v414_v30 = vld [vmem:[#allocation2] sm:$0x1]  ;;  %v537_v32 = vld [vmem:[%s736_s1 + $0x30] ss:$0 sps:$4 sm:$0x33]  }
  0x17   :  { %486 = vmatprep.mubr.msk.bf16.mxu0 %vm565_vm1, %v564_v2  ;;  %v538_v33 = vld [vmem:[%s738_s3] sm:$0xff]  }
  0x18   :  { %100 = vperm.xlu0 %529, %v53_v16   ;;  %105 = vperm.xlu1 %530, %v54_v17  }
  0x19   :  { %520 = vmatprep.mubr.msk.bf16.mxu1 %vm318_vm2, %v538_v33 }
  0x1c   :  { %110 = vperm.xlu0 %529, %v55_v19   ;;  %115 = vperm.xlu1 %530, %v56_v20  }
  0x1e   :  { %487 = vmatmul.mubr.msk.bf16.gmra.mrb[8].mxu0 %vm156_vm0, %v533_v18 }
  0x1f   :  { %490 = vmatprep.mubr.msk.bf16.mxu0 %vm565_vm1, %v564_v2 }
  0x20   :  { %120 = vperm.xlu0 %529, %v57_v21   ;;  %297 = vperm.xlu1 %530, %v292_v22  }
  0x24   :  { %302 = vperm.xlu0 %529, %v293_v24   ;;  %307 = vperm.xlu1 %530, %v294_v25  }
  0x26   :  { %491 = vmatmul.mubr.msk.bf16.gmra.mrb[12].mxu0 %vm156_vm0, %v534_v23 }
  0x27   :  { %494 = vmatprep.mubr.msk.bf16.mxu0 %vm565_vm1, %v564_v2 }
  0x28   :  { %385 = vperm.xlu0 %529, %v380_v26   ;;  %390 = vperm.xlu1 %530, %v381_v27  }
  0x2c   :  { %395 = vperm.xlu0 %529, %v382_v29   ;;  %417 = vperm.xlu1 %530, %v414_v30  }
  0x2e   :  { %495 = vmatmul.mubr.msk.bf16.gmra.mrb[16].mxu0 %vm156_vm0, %v535_v28 }
  0x2f   :  { %498 = vmatprep.mubr.msk.bf16.mxu0 %vm565_vm1, %v564_v2 }
  0x36   :  { %499 = vmatmul.mubr.msk.bf16.gmra.mrb[20].mxu0 %vm156_vm0, %v536_v31 }
  0x37   :  { %502 = vmatprep.mubr.msk.bf16.mxu0 %vm565_vm1, %v564_v2 }
  0x3e   :  { %503 = vmatmul.mubr.msk.bf16.gmra.mrb[24].mxu0 %vm156_vm0, %v537_v32 }
  0x85   :  { %v61_v34 = vpop.permute.xlu0 %60  ;;  %v71_v42 = vpop.permute.xlu1 %70 }
  0x89   :  { %v66_v38 = vpop.permute.xlu0 %65  ;;  %v76_v49 = vpop.permute.xlu1 %75 }
  0x8f   :  { %v81_v56 = vpop.permute.xlu0 %80  ;;  %v86_v60 = vpop.permute.xlu1 %85 }
  0x93   :  { %v91_v3 = vpop.permute.xlu0 %90  ;;  %v96_v7 = vpop.permute.xlu1 %95 }
  0x97   :  { %v101_v14 = vpop.permute.xlu0 %100  ;;  %v106_v18 = vpop.permute.xlu1 %105 }
  0x9b   :  { %v111_v25 = vpop.permute.xlu0 %110  ;;  %v116_v29 = vpop.permute.xlu1 %115 }
  0xe1   :  { %v215_v35 = vpop.f32.mrb[0].mxu0 }
  0xe2   :  { %v216_v36 = vadd.f32 %v215_v35, %v61_v34  ;;  %v480_v37 = vpop.f32.mrb[1].mxu0 }
  0xe3   :  { %v218_v39 = vpop.f32.mrb[2].mxu0 }
  0xe4   :  { %v219_v40 = vadd.f32 %v218_v39, %v66_v38  ;;  %v481_v41 = vpop.f32.mrb[3].mxu0  ;;  %v269_v43 = vmax.f32 %v216_v36, 0.0  ;;  %v121_v36 = vpop.permute.xlu0 %120 }
  0xe6   :  { %v270_v44 = vmax.f32 %v219_v40, 0.0 }
  0xe8   :  { %v285_v45 = vpack.c.bf16 %v270_v44, %v269_v43 }
  0xe9   :  { %v223_v46 = vpop.f32.mrb[4].mxu0 }
  0xea   :  { %v224_v47 = vadd.f32 %v223_v46, %v71_v42  ;;  %v484_v48 = vpop.f32.mrb[5].mxu0  ;;  %506 = vmatprep.subr.bf16.mxu1 %v285_v45  ;;  %v298_v46 = vpop.permute.xlu1 %297 }
  0xeb   :  { %v226_v50 = vpop.f32.mrb[6].mxu0  ;;  %507 = vmatpush3.bf16.msra.mxu1 %v285_v45  ;;  %v539_v45 = vld [vmem:[%s738_s3 + $0x8] ss:$0 sps:$4 sm:$0x33]   ;;  %s567_s3 = smov [#allocation3]  }
  0xec   :  { %v227_v51 = vadd.f32 %v226_v50, %v76_v49  ;;  %v485_v52 = vpop.f32.mrb[7].mxu0  ;;  %v271_v53 = vmax.f32 %v224_v47, 0.0  ;;  %v303_v47 = vpop.permute.xlu0 %302  ;;  %s433_s0 = sshll.u32 %s567_s3, 4  ;;  %s434_s0 = int_to_ptr.vmem [resolvable:$true] %s433_s0 }
  0xed   :  { %s540_s29 = scalar_lea.vmem %s434_s0, 16  ;;  %s544_s30 = scalar_lea.vmem %s434_s0, 32 }
  0xee   :  { %v272_v54 = vmax.f32 %v227_v51, 0.0  ;;  %v308_v48 = vpop.permute.xlu1 %307  ;;  %p541_p0 = scmp.ne.s32.totalorder %s434_s0, %s540_s29  ;;  %p545_p1 = scmp.lt.s32.totalorder %s434_s0, %s434_s0 }
  0xef   :  { %p546_p2 = scmp.lt.s32.totalorder %s544_s30, %s540_s29 }
  0xf0   :  { %v286_v55 = vpack.c.bf16 %v272_v54, %v271_v53  ;;  %v386_v50 = vpop.permute.xlu0 %385 }
  0xf1   :  { %v231_v57 = vpop.f32.mrb[8].mxu0  ;;  %p547_p3 = por %p546_p2, %p545_p1 }
  0xf2   :  { %v232_v58 = vadd.f32 %v231_v57, %v81_v56  ;;  %v488_v59 = vpop.f32.mrb[9].mxu0  ;;  %508 = vmatprep.subr.bf16.mxu1 %v286_v55 }
  0xf3   :  { %v234_v61 = vpop.f32.mrb[10].mxu0  ;;  %509 = vmatpush3.bf16.msra.mxu1 %v286_v55  ;;  %p548_p4 = pnand %p547_p3, %p541_p0 }
  0xf4   :  { %v235_v62 = vadd.f32 %v234_v61, %v86_v60  ;;  %v489_v63 = vpop.f32.mrb[11].mxu0  ;;  %v273_v0 = vmax.f32 %v232_v58, 0.0  ;;  %v391_v61 = vpop.permute.xlu1 %390 }
  0xf6   :  { %v274_v1 = vmax.f32 %v235_v62, 0.0  ;;  %v396_v62 = vpop.permute.xlu0 %395 }
  0xf8   :  { %v287_v2 = vpack.c.bf16 %v274_v1, %v273_v0 }
  0xf9   :  { %v239_v4 = vpop.f32.mrb[12].mxu0 }
  0xfa   :  { %v240_v5 = vadd.f32 %v239_v4, %v91_v3  ;;  %v492_v6 = vpop.f32.mrb[13].mxu0  ;;  %510 = vmatprep.subr.bf16.mxu1 %v287_v2 }
  0xfb   :  { %v242_v8 = vpop.f32.mrb[14].mxu0  ;;  %511 = vmatpush3.bf16.msra.mxu1 %v287_v2 }
  0xfc   :  { %v243_v9 = vadd.f32 %v242_v8, %v96_v7  ;;  %v493_v10 = vpop.f32.mrb[15].mxu0  ;;  %v275_v11 = vmax.f32 %v240_v5, 0.0  ;;  %v420_v5 = vlaneseq }
  0xfe   :  { %v276_v12 = vmax.f32 %v243_v9, 0.0  ;;  %v421_v8 = vshrl.u32 %v420_v5, 7 }
 0x100   :  { %v288_v13 = vpack.c.bf16 %v276_v12, %v275_v11  ;;  %v422_v11 = vsub.s32 0, %v421_v8 }
 0x101   :  { %v247_v15 = vpop.f32.mrb[16].mxu0 }
 0x102   :  { %v248_v16 = vadd.f32 %v247_v15, %v101_v14  ;;  %v496_v17 = vpop.f32.mrb[17].mxu0  ;;  %512 = vmatprep.subr.bf16.mxu1 %v288_v13 }
 0x103   :  { %v250_v19 = vpop.f32.mrb[18].mxu0  ;;  %513 = vmatpush3.bf16.msra.mxu1 %v288_v13  ;;  %v418_v13 = vpop.permute.xlu1 %417 }
 0x104   :  { %v251_v20 = vadd.f32 %v250_v19, %v106_v18  ;;  %v497_v21 = vpop.f32.mrb[19].mxu0  ;;  %v277_v22 = vmax.f32 %v248_v16, 0.0  ;;  %v423_v15 = vrot.slane %v418_v13, %v422_v11 }
 0x106   :  { %v278_v23 = vmax.f32 %v251_v20, 0.0 }
 0x108   :  { %v289_v24 = vpack.c.bf16 %v278_v23, %v277_v22 }
 0x109   :  { %v255_v26 = vpop.f32.mrb[20].mxu0 }
 0x10a   :  { %v256_v27 = vadd.f32 %v255_v26, %v111_v25  ;;  %v500_v28 = vpop.f32.mrb[21].mxu0  ;;  %514 = vmatprep.subr.bf16.mxu1 %v289_v24 }
 0x10b   :  { %v258_v30 = vpop.f32.mrb[22].mxu0  ;;  %515 = vmatpush3.bf16.msra.mxu1 %v289_v24 }
 0x10c   :  { %v259_v31 = vadd.f32 %v258_v30, %v116_v29  ;;  %v501_v32 = vpop.f32.mrb[23].mxu0  ;;  %v279_v33 = vmax.f32 %v256_v27, 0.0 }
 0x10e   :  { %v280_v34 = vmax.f32 %v259_v31, 0.0 }
 0x110   :  { %v290_v35 = vpack.c.bf16 %v280_v34, %v279_v33 }
 0x111   :  { %v263_v37 = vpop.f32.mrb[24].mxu0 }
 0x112   :  { %v264_v38 = vadd.f32 %v263_v37, %v121_v36  ;;  %v504_v39 = vpop.f32.mrb[25].mxu0  ;;  %516 = vmatprep.subr.bf16.mxu1 %v290_v35 }
 0x113   :  { %v266_v40 = vpop.f32.mrb[26].mxu0  ;;  %517 = vmatpush3.bf16.msra.mxu1 %v290_v35 }
 0x114   :  { %v281_v41 = vmax.f32 %v264_v38, 0.0  ;;  %v505_v42 = vpop.f32.mrb[27].mxu0 }
 0x116   :  { %v291_v43 = vpack.c.bf16 %v281_v41, %v281_v41 }
 0x118   :  { %524 = vmatprep.subr.msk.bf16.mxu1 %vm325_vm3, %v291_v43  ;;  %v327_v44 = vsel %vm325_vm3, %v291_v43, 0 }
 0x119   :  { %519 = vmatpush3.bf16.msra.mxu1 %v327_v44 }
 0x11c   :  { %521 = vmatmul.mubr.msk.bf16.vlgmr.msra.gmra.mrb[0].mxu1 %vm318_vm2, %v539_v45 }
 0x1ef   :  { %v522_v49 = vpop.f32.mrb[0].mxu1 }
 0x1f0   :  { %v372_v51 = vadd.f32 %v522_v49, %v308_v48  ;;  %v363_v52 = vpop.f32.mrb[1].mxu1 }
 0x1f1   :  { %v364_v53 = vadd.f32 %v363_v52, %v298_v46  ;;  %v523_v54 = vpop.f32.mrb[2].mxu1 }
 0x1f2   :  { %v366_v55 = vpop.f32.mrb[3].mxu1  ;;  %v379_v56 = vmax.f32 %v372_v51, 0.0 }
 0x1f3   :  { %v377_v57 = vmax.f32 %v364_v53, 0.0  ;;  %v367_v58 = vadd.f32 %v366_v55, %v303_v47 }
 0x1f4   :  { %v400_v63 = vmul.f32 %v396_v62, %v379_v56 }
 0x1f5   :  { %v398_v59 = vmul.f32 %v386_v50, %v377_v57  ;;  %v378_v60 = vmax.f32 %v367_v58, 0.0 }
 0x1f6   :  { %v406_v4 = vsel %vm405_vm5, %v400_v63, 0.0 }
 0x1f7   :  { %v399_v0 = vmul.f32 %v391_v61, %v378_v60  ;;  %v402_v1 = vsel %vm401_vm4, %v398_v59, 0.0 }
 0x1f9   :  { %v403_v2 = vsel %vm401_vm4, %v399_v0, 0.0 }
 0x1fa   :  { %v404_v3 = vadd.f32 %v403_v2, %v402_v1 }
 0x1fc   :  { %v407_v6 = vadd.f32 %v406_v4, %v404_v3 }
 0x1fe   :  { %v408_v7 = vrot.slane %v407_v6, 4 }
 0x200   :  { %v409_v9 = vadd.f32 %v408_v7, %v407_v6 }
 0x202   :  { %v410_v10 = vrot.slane %v409_v9, 2 }
 0x204   :  { %v411_v12 = vadd.f32 %v410_v10, %v409_v9 }
 0x206   :  { %v412_v14 = vrot.slane %v411_v12, 1 }
 0x208   :  { %v413_v16 = vadd.f32 %v412_v14, %v411_v12 }
 0x20a   :  { %v424_v17 = vadd.f32 %v423_v15, %v413_v16 }
 0x20c   :  { %426 = vst.msk [vmem:[#allocation3] sm:$0x1] %vm425_vm6, %v424_v17 }
 0x20d   :  { %551 = shalt.err (!%p548_p4)
}
 0x20e   :  { %s552_s10 = scalar_lea.hbm %s742_s7, 16 }
 0x20f   :  { %p553_p5 = scmp.ne.s32.totalorder %s742_s7, %s552_s10  ;;  %p556_p6 = scmp.lt.u32.totalorder %s552_s10, %s742_s7 }
 0x211   :  { %p558_p7 = pnand %p556_p6, %p553_p5 }
 0x213   :  { %561 = shalt.err (!%p558_p7)
}
 0x214   :  { %436 = dma.vmem_to_hbm [thread:$0]  %s434_s0, 16, %s742_s7, [#allocation4]  }
 0x215   :  { %562 = dma.done.wait [#allocation4], 16  }
 0x216   :  { %563 = vsyncadd [#allocation4], 4294967280 }
 0x217   :  { %440 = vsyncpa [#allocation4], 1 }

</bundles_post_ra>
